<compile_context>
chip_gen: v6e
topology: v6e:2x2x1
jax: 0.10.0
libtpu: 0.0.40
codegen_flags: <defaults>
</compile_context>

<pallas_src>
import jax
import jax.numpy as jnp
from jax.experimental import pallas as pl
from jax.experimental.pallas import tpu as pltpu

SUBLANE = 8
NEG_SLOPE = 0.1  # CondENet uses nn.LeakyReLU(0.1) explicitly.

V5E_SCOPED_VMEM_DEFAULT = 16 * 1024 * 1024  # smallest default (v5e); v6e/v7x = 32 MiB
VMEM_LIMIT_CAP = 48 * 1024 * 1024           # stay well under v7x's 64 MiB physical VMEM


def _round_up(x, m):
    return ((x + m - 1) // m) * m


def condenet_kernel(x_ref, w1_ref, b1_ref, w2_ref, b2_ref, w3_ref, b3_ref, o_ref):
    """Fused 3-layer MLP forward for one batch tile (all f32, MXU f32 accumulation)."""
    x = x_ref[...]

    # Layer 1: Linear + LeakyReLU(0.1)
    h = jnp.dot(x, w1_ref[...], preferred_element_type=jnp.float32) + b1_ref[...]
    h = jnp.where(h > 0, h, NEG_SLOPE * h)

    # Layer 2: Linear + LeakyReLU(0.1)
    h = jnp.dot(h, w2_ref[...], preferred_element_type=jnp.float32) + b2_ref[...]
    h = jnp.where(h > 0, h, NEG_SLOPE * h)

    # Layer 3: Linear (no activation)
    out = jnp.dot(h, w3_ref[...], preferred_element_type=jnp.float32) + b3_ref[...]
    o_ref[...] = out.astype(o_ref.dtype)


def _choose_tile_b(batch, max_tile_b):
    """Sublane-aligned batch tile; as large as allowed (amortizes per-step overhead)."""
    tile = min(_round_up(batch, SUBLANE), max_tile_b)
    return max(SUBLANE, _round_up(tile, SUBLANE))


def _vmem_limit_bytes(tile_b, d_in, h, o):
    """Explicit VMEM budget; only raise the scoped limit if the budget needs it."""
    needed = (
        2 * tile_b * d_in * 4                               # x tile (double-buffered)
        + 2 * tile_b * o * 4                                # out tile (double-buffered)
        + 2 * (d_in * h + h * h + h * o + 2 * h + o) * 4   # weights + biases
        + 2 * tile_b * h * 4                                # f32 h1/h2 intermediates
    )
    budget = int(1.5 * needed)  # headroom for compiler scratch / pipelining
    if budget <= V5E_SCOPED_VMEM_DEFAULT:
        return None  # fits within every generation's default scoped limit
    return min(budget, VMEM_LIMIT_CAP)


def condenet_forward(x, params, *, tile_b=None, max_tile_b=2048):
    """Run the fused CondENet MLP via pallas_call.

    x: (B, D_in) float32
    params: dict with w1 (D_in,H), b1 (1,H), w2 (H,H), b2 (1,H), w3 (H,O), b3 (1,O)
            (weights already transposed vs. PyTorch's (out, in) so y = x @ W + b).
    """
    B, D_in = x.shape
    H = params["w1"].shape[1]
    O = params["w3"].shape[1]

    if tile_b is None:
        tile_b = _choose_tile_b(B, max_tile_b)
    tile_b = max(SUBLANE, _round_up(tile_b, SUBLANE))

    grid = (pl.cdiv(B, tile_b),)  # ragged last block handled by Pallas (masked writes)

    # No padding / dtype conversion passes: real shapes, f32 throughout
    # (astype is a no-op when inputs are already f32).
    xf = x.astype(jnp.float32)
    w1 = params["w1"].astype(jnp.float32)
    b1 = params["b1"].astype(jnp.float32)
    w2 = params["w2"].astype(jnp.float32)
    b2 = params["b2"].astype(jnp.float32)
    w3 = params["w3"].astype(jnp.float32)
    b3 = params["b3"].astype(jnp.float32)

    # Grid-invariant weights/biases: constant index_map => DMA'd once.
    def const_spec(shape):
        return pl.BlockSpec(shape, lambda i: (0, 0))

    out = pl.pallas_call(
        condenet_kernel,
        out_shape=jax.ShapeDtypeStruct((B, O), jnp.float32),
        grid_spec=pltpu.PrefetchScalarGridSpec(
            num_scalar_prefetch=0,
            grid=grid,
            in_specs=[
                pl.BlockSpec((tile_b, D_in), lambda i: (i, 0)),  # x tile
                const_spec((D_in, H)),  # w1
                const_spec((1, H)),     # b1
                const_spec((H, H)),     # w2
                const_spec((1, H)),     # b2
                const_spec((H, O)),     # w3
                const_spec((1, O)),     # b3
            ],
            out_specs=pl.BlockSpec((tile_b, O), lambda i: (i, 0)),
        ),
        compiler_params=pltpu.CompilerParams(
            dimension_semantics=("parallel",),
            vmem_limit_bytes=_vmem_limit_bytes(tile_b, D_in, H, O),
        ),
    )(xf, w1, b1, w2, b2, w3, b3)

    return out


def condenet_apply(sources, targets, params, **kw):
    """Mirrors CondENet.forward: concat source list (+ optional targets) then MLP."""
    if isinstance(sources, (list, tuple)):
        sources = jnp.concatenate(list(sources), axis=-1)
    if targets is not None:
        sources = jnp.concatenate([sources, targets], axis=-1)
    return condenet_forward(sources, params, **kw)


def init_params(key, in_dim, hid_dim, out_dim):
    """Deterministic init mimicking nn.Linear default (uniform(-1/sqrt(fan_in), ...))."""
    ks = jax.random.split(key, 6)

    def linear(kw, kb, fan_in, fan_out):
        bound = 1.0 / jnp.sqrt(fan_in)
        w = jax.random.uniform(kw, (fan_in, fan_out), jnp.float32, -bound, bound)
        b = jax.random.uniform(kb, (1, fan_out), jnp.float32, -bound, bound)
        return w, b

    w1, b1 = linear(ks[0], ks[1], in_dim, hid_dim)
    w2, b2 = linear(ks[2], ks[3], hid_dim, hid_dim)
    w3, b3 = linear(ks[4], ks[5], hid_dim, out_dim)
    return {"w1": w1, "b1": b1, "w2": w2, "b2": b2, "w3": w3, "b3": b3}


def condenet_ref(x, params):
    """Pure-JAX f32 reference of the same forward pass."""
    h = jnp.dot(x, params["w1"], preferred_element_type=jnp.float32) + params["b1"]
    h = jnp.where(h > 0, h, NEG_SLOPE * h)
    h = jnp.dot(h, params["w2"], preferred_element_type=jnp.float32) + params["b2"]
    h = jnp.where(h > 0, h, NEG_SLOPE * h)
    return jnp.dot(h, params["w3"], preferred_element_type=jnp.float32) + params["b3"]


if __name__ == "__main__":
    key = jax.random.PRNGKey(0)
    k_src, k_tgt, k_param = jax.random.split(key, 3)

    # Small shapes: sources is a list of two tensors, plus targets, concatenated
    # along the last dim (as in CondENet.forward).
    batch = 8
    src_dims = (12, 8)
    tgt_dim = 12
    in_dim = sum(src_dims) + tgt_dim   # 32
    hid_dim = 32
    out_dim = 8

    sources = [
        jax.random.normal(k_src, (batch, src_dims[0]), jnp.float32),
        jax.random.normal(jax.random.fold_in(k_src, 1), (batch, src_dims[1]), jnp.float32),
    ]
    targets = jax.random.normal(k_tgt, (batch, tgt_dim), jnp.float32)

    params = init_params(k_param, in_dim, hid_dim, out_dim)

    out = condenet_apply(sources, targets, params)
    out = jax.block_until_ready(out)
    assert out.shape == (batch, out_dim)

    x = jnp.concatenate(sources + [targets], axis=-1)  # (8, 32)
    ref = condenet_ref(x, params)
    assert jnp.allclose(out, ref, atol=3e-2, rtol=3e-2), \
        float(jnp.max(jnp.abs(out - ref)))

    # Ragged-batch / multi-program path: grid = cdiv(B, tile_b) with a partial
    # last block (masked writes), no wrapper-side padding of x.
    batch2 = 20
    x2 = jax.random.normal(jax.random.fold_in(key, 7), (batch2, in_dim), jnp.float32)
    out2 = jax.block_until_ready(condenet_forward(x2, params, tile_b=8))
    ref2 = condenet_ref(x2, params)
    assert out2.shape == (batch2, out_dim)
    assert jnp.allclose(out2, ref2, atol=3e-2, rtol=3e-2), \
        float(jnp.max(jnp.abs(out2 - ref2)))

    print("KERNEL_OK")
</pallas_src>

<mosaic_0001>
module attributes {stable_mosaic.version = 11 : i64} {
  func.func @condenet_kernel(%arg0: i32, %arg1: memref<8x32xf32, #tpu.memory_space<vmem>>, %arg2: memref<32x32xf32, #tpu.memory_space<vmem>>, %arg3: memref<1x32xf32, #tpu.memory_space<vmem>>, %arg4: memref<32x32xf32, #tpu.memory_space<vmem>>, %arg5: memref<1x32xf32, #tpu.memory_space<vmem>>, %arg6: memref<32x8xf32, #tpu.memory_space<vmem>>, %arg7: memref<1x8xf32, #tpu.memory_space<vmem>>, %arg8: memref<8x8xf32, #tpu.memory_space<vmem>>) attributes {dimension_semantics = [#tpu.dimension_semantics<parallel>], iteration_bounds = array<i64: 1>, scalar_prefetch = 0 : i64, scratch_operands = 0 : i64, tpu.core_type = #tpu.core_type<tc>, window_params = [{transform_indices = @transform_0, window_bounds = array<i64: 8, 32>}, {pipeline_mode = #tpu.pipeline_mode<synchronous>, transform_indices = @transform_1, window_bounds = array<i64: 32, 32>}, {pipeline_mode = #tpu.pipeline_mode<synchronous>, transform_indices = @transform_2, window_bounds = array<i64: 1, 32>}, {pipeline_mode = #tpu.pipeline_mode<synchronous>, transform_indices = @transform_3, window_bounds = array<i64: 32, 32>}, {pipeline_mode = #tpu.pipeline_mode<synchronous>, transform_indices = @transform_4, window_bounds = array<i64: 1, 32>}, {pipeline_mode = #tpu.pipeline_mode<synchronous>, transform_indices = @transform_5, window_bounds = array<i64: 32, 8>}, {pipeline_mode = #tpu.pipeline_mode<synchronous>, transform_indices = @transform_6, window_bounds = array<i64: 1, 8>}, {transform_indices = @transform_7, window_bounds = array<i64: 8, 8>}]} {
    %c0 = arith.constant 0 : index
    %c0_0 = arith.constant 0 : index
    %0 = vector.load %arg1[%c0, %c0_0] : memref<8x32xf32, #tpu.memory_space<vmem>>, vector<8x32xf32>
    %c0_1 = arith.constant 0 : index
    %c0_2 = arith.constant 0 : index
    %1 = vector.load %arg2[%c0_1, %c0_2] : memref<32x32xf32, #tpu.memory_space<vmem>>, vector<32x32xf32>
    %cst = arith.constant dense<0.000000e+00> : vector<8x32xf32>
    %2 = tpu.matmul %0, %1, %cst {dimension_numbers = #tpu.dot_dimension_numbers<[1], [0], [0], [1], [0, 0, 1, 1], [], []>} : vector<8x32xf32>, vector<32x32xf32>, vector<8x32xf32> -> vector<8x32xf32>
    %c0_3 = arith.constant 0 : index
    %c0_4 = arith.constant 0 : index
    %3 = vector.load %arg3[%c0_3, %c0_4] : memref<1x32xf32, #tpu.memory_space<vmem>>, vector<1x32xf32>
    %4 = vector.broadcast %3 : vector<1x32xf32> to vector<8x32xf32>
    %5 = arith.addf %2, %4 : vector<8x32xf32>
    %cst_5 = arith.constant 0.000000e+00 : f32
    %6 = vector.broadcast %cst_5 : f32 to vector<8x32xf32>
    %7 = arith.cmpf ogt, %5, %6 : vector<8x32xf32>
    %cst_6 = arith.constant 1.000000e-01 : f32
    %8 = vector.broadcast %cst_6 : f32 to vector<8x32xf32>
    %9 = arith.mulf %8, %5 : vector<8x32xf32>
    %10 = arith.select %7, %5, %9 : vector<8x32xi1>, vector<8x32xf32>
    %c0_7 = arith.constant 0 : index
    %c0_8 = arith.constant 0 : index
    %11 = vector.load %arg4[%c0_7, %c0_8] : memref<32x32xf32, #tpu.memory_space<vmem>>, vector<32x32xf32>
    %cst_9 = arith.constant dense<0.000000e+00> : vector<8x32xf32>
    %12 = tpu.matmul %10, %11, %cst_9 {dimension_numbers = #tpu.dot_dimension_numbers<[1], [0], [0], [1], [0, 0, 1, 1], [], []>} : vector<8x32xf32>, vector<32x32xf32>, vector<8x32xf32> -> vector<8x32xf32>
    %c0_10 = arith.constant 0 : index
    %c0_11 = arith.constant 0 : index
    %13 = vector.load %arg5[%c0_10, %c0_11] : memref<1x32xf32, #tpu.memory_space<vmem>>, vector<1x32xf32>
    %14 = vector.broadcast %13 : vector<1x32xf32> to vector<8x32xf32>
    %15 = arith.addf %12, %14 : vector<8x32xf32>
    %cst_12 = arith.constant 0.000000e+00 : f32
    %16 = vector.broadcast %cst_12 : f32 to vector<8x32xf32>
    %17 = arith.cmpf ogt, %15, %16 : vector<8x32xf32>
    %cst_13 = arith.constant 1.000000e-01 : f32
    %18 = vector.broadcast %cst_13 : f32 to vector<8x32xf32>
    %19 = arith.mulf %18, %15 : vector<8x32xf32>
    %20 = arith.select %17, %15, %19 : vector<8x32xi1>, vector<8x32xf32>
    %c0_14 = arith.constant 0 : index
    %c0_15 = arith.constant 0 : index
    %21 = vector.load %arg6[%c0_14, %c0_15] : memref<32x8xf32, #tpu.memory_space<vmem>>, vector<32x8xf32>
    %cst_16 = arith.constant dense<0.000000e+00> : vector<8x8xf32>
    %22 = tpu.matmul %20, %21, %cst_16 {dimension_numbers = #tpu.dot_dimension_numbers<[1], [0], [0], [1], [0, 0, 1, 1], [], []>} : vector<8x32xf32>, vector<32x8xf32>, vector<8x8xf32> -> vector<8x8xf32>
    %c0_17 = arith.constant 0 : index
    %c0_18 = arith.constant 0 : index
    %23 = vector.load %arg7[%c0_17, %c0_18] : memref<1x8xf32, #tpu.memory_space<vmem>>, vector<1x8xf32>
    %24 = vector.broadcast %23 : vector<1x8xf32> to vector<8x8xf32>
    %25 = arith.addf %22, %24 : vector<8x8xf32>
    %c0_19 = arith.constant 0 : index
    %c0_20 = arith.constant 0 : index
    %26 = vector.load %arg8[%c0_19, %c0_20] : memref<8x8xf32, #tpu.memory_space<vmem>>, vector<8x8xf32>
    tpu.vector_store %arg8[%c0_19, %c0_20], %25 {strides = array<i32>} : memref<8x8xf32, #tpu.memory_space<vmem>>, vector<8x8xf32>,
    return
  }
  func.func @transform_0(%arg0: i32) -> (i32, i32) {
    %c0_i32 = arith.constant 0 : i32
    %c0_i32_0 = arith.constant 0 : i32
    return %arg0, %c0_i32 : i32, i32
  }
  func.func @transform_1(%arg0: i32) -> (i32, i32) {
    %c0_i32 = arith.constant 0 : i32
    %c0_i32_0 = arith.constant 0 : i32
    %c0_i32_1 = arith.constant 0 : i32
    return %c0_i32, %c0_i32_0 : i32, i32
  }
  func.func @transform_2(%arg0: i32) -> (i32, i32) {
    %c0_i32 = arith.constant 0 : i32
    %c0_i32_0 = arith.constant 0 : i32
    %c0_i32_1 = arith.constant 0 : i32
    return %c0_i32, %c0_i32_0 : i32, i32
  }
  func.func @transform_3(%arg0: i32) -> (i32, i32) {
    %c0_i32 = arith.constant 0 : i32
    %c0_i32_0 = arith.constant 0 : i32
    %c0_i32_1 = arith.constant 0 : i32
    return %c0_i32, %c0_i32_0 : i32, i32
  }
  func.func @transform_4(%arg0: i32) -> (i32, i32) {
    %c0_i32 = arith.constant 0 : i32
    %c0_i32_0 = arith.constant 0 : i32
    %c0_i32_1 = arith.constant 0 : i32
    return %c0_i32, %c0_i32_0 : i32, i32
  }
  func.func @transform_5(%arg0: i32) -> (i32, i32) {
    %c0_i32 = arith.constant 0 : i32
    %c0_i32_0 = arith.constant 0 : i32
    %c0_i32_1 = arith.constant 0 : i32
    return %c0_i32, %c0_i32_0 : i32, i32
  }
  func.func @transform_6(%arg0: i32) -> (i32, i32) {
    %c0_i32 = arith.constant 0 : i32
    %c0_i32_0 = arith.constant 0 : i32
    %c0_i32_1 = arith.constant 0 : i32
    return %c0_i32, %c0_i32_0 : i32, i32
  }
  func.func @transform_7(%arg0: i32) -> (i32, i32) {
    %c0_i32 = arith.constant 0 : i32
    %c0_i32_0 = arith.constant 0 : i32
    return %arg0, %c0_i32 : i32, i32
  }
}

</mosaic_0001>

<bundles_post_ra>
// kernel: tpu_custom_call.1
= control target key start
LH: loop header
LB: loop body
LE: loop exit
PB: predicated region body
PF: predicated region fallthrough
CT: control target
= control target key end

     0   :  { %12 = vsyncpa [#allocation3], 0  ;;  %s553_s0 = inlined_call_operand.vmem [shape: f32[8,32], index: 0, kind: input, shape index: {}]   ;;  %s554_s1 = inlined_call_operand.vmem [shape: f32[32,32], index: 1, kind: input, shape index: {}]   ;;  %s555_s2 = inlined_call_operand.vmem [shape: f32[1,32], index: 2, kind: input, shape index: {}]   ;;  %s556_s3 = inlined_call_operand.hbm [shape: f32[32,32], index: 3, kind: input, shape index: {}]   ;;  %s557_s4 = inlined_call_operand.hbm [shape: f32[1,32], index: 4, kind: input, shape index: {}]   ;;  %s558_s5 = inlined_call_operand.vmem [shape: f32[32,8], index: 5, kind: input, shape index: {}]   ;;  %s559_s6 = inlined_call_operand.vmem [shape: f32[1,8], index: 6, kind: input, shape index: {}]   ;;  %s560_s7 = inlined_call_operand.hbm [shape: f32[8,8], index: 7, kind: output, shape index: {}]  }
   0x1   :  { %13 = vsyncpa [#allocation6], 0 }
   0x2   :  { %14 = vsyncpa [#allocation4], 0  ;;  %s458_s24 = smov [#allocation2]  }
   0x3   :  { %s26_s25 = sshll.u32 %s458_s24, 4  ;;  %s27_s25 = int_to_ptr.vmem [resolvable:$true] %s26_s25 }
   0x4   :  { %s400_s26 = scalar_lea.vmem %s27_s25, 512  ;;  %p405_p1 = scmp.lt.s32.totalorder %s27_s25, %s27_s25 }
   0x5   :  { %p401_p0 = scmp.ne.s32.totalorder %s27_s25, %s400_s26  ;;  %p406_p2 = scmp.lt.s32.totalorder %s400_s26, %s400_s26 }
   0x7   :  { %p407_p3 = por %p406_p2, %p405_p1 }
   0x9   :  { %p408_p4 = pnand %p407_p3, %p401_p0 }
   0xb   :  { %411 = shalt.err (!%p408_p4)
}
   0xc   :  { %s459_s27 = smov 128   ;;  %s460_s28 = smov 8  }
   0xd   :  { %32 = dma.hbm_to_vmem [thread:$0]  %s556_s3, 512, %s27_s25, [#allocation3], %s459_s27, %s459_s27, %s460_s28  }
   0xe   :  { %s461_s8 = smov [#allocation5]  }
   0xf   :  { %s39_s9 = sshll.u32 %s461_s8, 4  ;;  %s40_s9 = int_to_ptr.vmem [resolvable:$true] %s39_s9 }
  0x10   :  { %s420_s10 = scalar_lea.vmem %s40_s9, 16  ;;  %s424_s11 = scalar_lea.vmem %s40_s9, 32 }
  0x11   :  { %p421_p5 = scmp.ne.s32.totalorder %s40_s9, %s420_s10  ;;  %p425_p6 = scmp.lt.s32.totalorder %s40_s9, %s40_s9 }
  0x12   :  { %p426_p7 = scmp.lt.s32.totalorder %s424_s11, %s420_s10 }
  0x14   :  { %p427_p8 = por %p426_p7, %p425_p6 }
  0x16   :  { %p428_p9 = pnand %p427_p8, %p421_p5 }
  0x18   :  { %431 = shalt.err (!%p428_p9)
}
  0x19   :  { %42 = dma.hbm_to_vmem [thread:$0]  %s557_s4, 16, %s40_s9, [#allocation6]  }
  0x1a   :  { %452 = dma.done.wait [#allocation3], 512  }
  0x1b   :  { %453 = vsyncadd [#allocation3], 4294966784 }
  0x1c   :  { %454 = dma.done.wait [#allocation6], 16  }
  0x1d   :  { %455 = vsyncadd [#allocation6], 4294967280  ;;  %v462_v0 = vmov 0.0   ;;  %vm463_vm0 = vmmov 0   ;;  %v57_v1 = vld [vmem:[%s554_s1 + $0x18] sm:$0xff]  ;;  %v56_v2 = vld [vmem:[%s554_s1 + $0x10] sm:$0xff] }
  0x1e   :  { %352 = vmatprep.subr.mxu0 %v462_v0  ;;  %360 = vmatprep.mubr.msk.f32.mxu0 %vm463_vm0, %v462_v0  ;;  %v145_v3 = vld [vmem:[#allocation2 + $0x18] sm:$0xff]  ;;  %v55_v4 = vld [vmem:[%s554_s1 + $0x8] sm:$0xff]  ;;  %v54_v5 = vld [vmem:[%s554_s1] sm:$0xff]  ;;  %vm65_vm1 = vcmask 261120   ;;  %s464_s8 = smov [#allocation7]   ;;  %vm313_vm4 = vcmask 64512  }
  0x1f   :  { %363 = vmatprep.subr.mxu1 %v462_v0  ;;  %371 = vmatprep.mubr.msk.f32.mxu1 %vm463_vm0, %v462_v0  ;;  %v53_v6 = vld [vmem:[%s553_s0] sm:$0xff]  ;;  %v144_v7 = vld [vmem:[#allocation2 + $0x10] sm:$0xff]  ;;  %v143_v8 = vld [vmem:[#allocation2 + $0x8] sm:$0xff]  ;;  %s321_s9 = sshll.u32 %s464_s8, 4  ;;  %s322_s9 = int_to_ptr.vmem [resolvable:$true] %s321_s9 }
  0x20   :  { %353 = vmatpush3.msra.mxu0 %v57_v1  ;;  %364 = vmatpush3.msra.mxu1 %v145_v3  ;;  %v142_v9 = vld [vmem:[#allocation2] sm:$0xff]  ;;  %v232_v10 = vld [vmem:[%s558_s5 + $0x18] sm:$0xff]  ;;  %v231_v17 = vld [vmem:[%s558_s5 + $0x10] sm:$0xff]  ;;  %p437_p11 = scmp.lt.s32.totalorder %s322_s9, %s322_s9 }
  0x21   :  { %354 = vmatprep.subr.mxu0 %v462_v0  ;;  %365 = vmatprep.subr.mxu1 %v462_v0  ;;  %v331_v11 = vld [vmem:[%s555_s2] ss:$0 sm:$0xff]  ;;  %v230_v18 = vld [vmem:[%s558_s5 + $0x8] sm:$0xff] }
  0x22   :  { %355 = vmatpush3.msra.mxu0 %v56_v2  ;;  %366 = vmatpush3.msra.mxu1 %v144_v7  ;;  %v229_v19 = vld [vmem:[%s558_s5] sm:$0xff]  ;;  %s432_s5 = scalar_lea.vmem %s322_s9, 128 }
  0x23   :  { %356 = vmatprep.subr.mxu0 %v462_v0  ;;  %367 = vmatprep.subr.mxu1 %v462_v0  ;;  %v333_v20 = vld [vmem:[#allocation5] ss:$0 sm:$0xff]  ;;  %p433_p10 = scmp.ne.s32.totalorder %s322_s9, %s432_s5  ;;  %p438_p12 = scmp.lt.s32.totalorder %s432_s5, %s432_s5 }
  0x24   :  { %357 = vmatpush3.msra.mxu0 %v55_v4  ;;  %368 = vmatpush3.msra.mxu1 %v143_v8  ;;  %v335_v26 = vld [vmem:[%s559_s6] ss:$0 sm:$0xff] }
  0x25   :  { %358 = vmatprep.subr.mxu0 %v462_v0  ;;  %369 = vmatprep.subr.mxu1 %v462_v0  ;;  %p439_p13 = por %p438_p12, %p437_p11 }
  0x26   :  { %359 = vmatpush3.msra.mxu0 %v54_v5  ;;  %370 = vmatpush3.msra.mxu1 %v142_v9 }
  0x27   :  { %361 = vmatmul.mubr.msk.f32.vlgmr.msra.gmra.mxu0 %vm65_vm1, %v53_v6  ;;  %374 = vmatprep.subr.mxu0 %v462_v0  ;;  %p440_p0 = pnand %p439_p13, %p433_p10 }
  0x28   :  { %382 = vmatprep.mubr.msk.f32.mxu0 %vm463_vm0, %v462_v0  ;;  %375 = vmatpush3.msra.mxu0 %v232_v10 }
  0x29   :  { %376 = vmatprep.subr.mxu0 %v462_v0 }
  0x2a   :  { %377 = vmatpush3.msra.mxu0 %v231_v17 }
  0x2b   :  { %378 = vmatprep.subr.mxu0 %v462_v0 }
  0x2c   :  { %379 = vmatpush3.msra.mxu0 %v230_v18 }
  0x2d   :  { %380 = vmatprep.subr.mxu0 %v462_v0 }
  0x2e   :  { %381 = vmatpush3.msra.mxu0 %v229_v19 }
  0xe7   :  { %v135_v12 = vpop.f32.mrf.mxu0 }
  0xe8   :  { %v136_v13 = vadd.f32 %v331_v11, %v135_v12 }
  0xe9   :  { %v362_v14 = vpop.f32.mrf.mxu0 }
  0xea   :  { %vm139_vm2 = vcmp.gt.f32.partialorder %v136_v13, 0.0  ;;  %v140_v15 = vmul.f32 0.1, %v136_v13 }
  0xec   :  { %v141_v16 = vsel %vm139_vm2, %v136_v13, %v140_v15 }
  0xed   :  { %372 = vmatmul.mubr.msk.f32.vlgmr.msra.gmra.mxu1 %vm65_vm1, %v141_v16 }
 0x1ad   :  { %v222_v21 = vpop.f32.mrf.mxu1 }
 0x1ae   :  { %v223_v22 = vadd.f32 %v333_v20, %v222_v21 }
 0x1af   :  { %v373_v23 = vpop.f32.mrf.mxu1 }
 0x1b0   :  { %vm226_vm3 = vcmp.gt.f32.partialorder %v223_v22, 0.0  ;;  %v227_v24 = vmul.f32 0.1, %v223_v22 }
 0x1b2   :  { %v228_v25 = vsel %vm226_vm3, %v223_v22, %v227_v24 }
 0x1b3   :  { %383 = vmatmul.mubr.msk.f32.vlgmr.msra.gmra.mxu0 %vm65_vm1, %v228_v25 }
 0x273   :  { %v309_v27 = vpop.f32.mrf.mxu0 }
 0x274   :  { %v310_v28 = vadd.f32 %v335_v26, %v309_v27 }
 0x275   :  { %v384_v29 = vpop.f32.mrf.mxu0 }
 0x276   :  { %314 = vst.msk [vmem:[#allocation7] sm:$0xff] %vm313_vm4, %v310_v28 }
 0x277   :  { %443 = shalt.err (!%p440_p0)
}
 0x278   :  { %324 = dma.vmem_to_hbm [thread:$0]  %s322_s9, 128, %s560_s7, [#allocation4]  }
 0x279   :  { %456 = dma.done.wait [#allocation4], 128  }
 0x27a   :  { %457 = vsyncadd [#allocation4], 4294967168 }
 0x27b   :  { %328 = vsyncpa [#allocation3], 1 }
 0x27c   :  { %329 = vsyncpa [#allocation6], 1 }
 0x27d   :  { %330 = vsyncpa [#allocation4], 1 }

</bundles_post_ra>
